<compile_context>
chip_gen: v6e
topology: v6e:2x2x1
jax: 0.10.0
libtpu: 0.0.40
codegen_flags: <defaults>
</compile_context>

<pallas_src>
import jax
import jax.numpy as jnp
from jax.experimental import pallas as pl
from jax.experimental.pallas import tpu as pltpu

C = 256  # fixed by the module definition (Conv2d(256, ...))


def _round_up(v, m):
    return ((v + m - 1) // m) * m


def _cdiv(a, b):
    return -(-a // b)


def _attn_gate_kernel(x_ref, w_ref, b_ref, o_ref):
    # x_ref: (1, C, T)  one batch element, channels on sublanes, T pixels on lanes
    # w_ref: (C, 1)     fused weight (W2 @ W1)^T in f32, broadcast over lanes
    # b_ref: (1,)       fused bias scalar, in SMEM
    # o_ref: (1, C, T)
    x = x_ref[0]                                                    # (C, T)
    # Channel reduction in f32 (bf16 x promotes against the f32 weight).
    a = jnp.sum(x * w_ref[...], axis=0, keepdims=True) + b_ref[0]   # (1, T) f32
    o_ref[0] = (x * (1.0 + a)).astype(o_ref.dtype)


def attention_layer(x, w1, b1, w2, b2, *, max_block_hw=4096):
    """AttentionLayer forward: out = x + conv2(conv1(x)) * x  (both convs 1x1).

    x : (N, 256, H, W) NCHW, f32 or bf16.
    w1: (256, 256, 1, 1), b1: (256,), w2: (1, 256, 1, 1), b2: (1,)  (PyTorch Conv2d params)
    """
    n, c, h, w = x.shape
    assert c == C
    hw = h * w
    x3 = x.reshape(n, c, hw)  # contiguous -> metadata-only reshape, no HBM pass

    # Exact algebraic fusion of the two 1x1 convs: a = (W2 @ W1) x + (W2 b1 + b2).
    w1_m = w1.reshape(C, C).astype(jnp.float32)   # (Cout, Cin)
    w2_m = w2.reshape(1, C).astype(jnp.float32)   # (1,    Cin)
    w_fused = (w2_m @ w1_m).reshape(C, 1)                                   # (C, 1)
    b_fused = (w2_m @ b1.reshape(C, 1).astype(jnp.float32)
               + b2.reshape(1, 1).astype(jnp.float32)).reshape(1)           # (1,)

    # Pixel tiling on the lane axis:
    #  * block_hw is always a multiple of 128 (lane-dense)
    #  * no padding in the wrapper: Pallas masks the trailing partial block
    #  * force >= 2 grid steps when possible so v7x megacore has work on both TCs
    max_block_hw = max(128, _round_up(max_block_hw, 128))
    hw_lanes = _round_up(hw, 128)
    block_hw = min(max_block_hw, hw_lanes)
    num_hw_blocks = _cdiv(hw, block_hw)
    if n * num_hw_blocks < 2 and hw_lanes >= 256:
        block_hw = _round_up(_cdiv(hw_lanes, 2), 128)
        num_hw_blocks = _cdiv(hw, block_hw)

    grid = (n, num_hw_blocks)

    out3 = pl.pallas_call(
        _attn_gate_kernel,
        out_shape=jax.ShapeDtypeStruct((n, c, hw), x.dtype),
        grid_spec=pltpu.PrefetchScalarGridSpec(
            num_scalar_prefetch=0,
            grid=grid,
            in_specs=[
                pl.BlockSpec((1, c, block_hw), lambda b, j: (b, 0, j)),   # x tile
                pl.BlockSpec((C, 1), lambda b, j: (0, 0)),                # fused weight (resident)
                pl.BlockSpec(memory_space=pltpu.MemorySpace.SMEM),        # fused bias scalar
            ],
            out_specs=pl.BlockSpec((1, c, block_hw), lambda b, j: (b, 0, j)),
        ),
        compiler_params=pltpu.CompilerParams(
            # Both axes independent -> shards across the two TensorCores on v7x.
            dimension_semantics=("parallel", "parallel"),
            # (1, 256, 4096) f32 blocks double-buffered in+out ~= 16 MiB; raise the
            # scoped-VMEM limit explicitly so this compiles on v5e (16 MiB default)
            # while staying well inside v7x's 64 MiB physical VMEM.
            vmem_limit_bytes=40 << 20,
        ),
        # NOTE: x could additionally be donated via input_output_aliases={0: 0} when
        # the caller does not need it afterwards (pure gate); left off by default.
    )(x3, w_fused, b_fused)

    return out3.reshape(n, c, h, w)


def _reference(x, w1, b1, w2, b2):
    # Plain-JAX f32 reference of the PyTorch forward (unfused: two 1x1 convs).
    xf = x.astype(jnp.float32)
    h = jnp.einsum("nchw,oc->nohw", xf, w1.reshape(C, C)) + b1[None, :, None, None]
    a = jnp.einsum("nchw,oc->nohw", h, w2.reshape(1, C)) + b2[None, :, None, None]
    return xf + a * xf


if __name__ == "__main__":
    key = jax.random.PRNGKey(0)
    kx, k1, k2, k3, k4 = jax.random.split(key, 5)

    # Small spatial; channel count fixed at 256 by the module.
    N, H, W = 2, 8, 8
    x = jax.random.normal(kx, (N, C, H, W), dtype=jnp.float32)

    # PyTorch Conv2d parameter shapes.
    w1 = jax.random.normal(k1, (C, C, 1, 1), dtype=jnp.float32) * 0.02
    b1 = jax.random.normal(k2, (C,), dtype=jnp.float32) * 0.02
    w2 = jax.random.normal(k3, (1, C, 1, 1), dtype=jnp.float32) * 0.02
    b2 = jax.random.normal(k4, (1,), dtype=jnp.float32) * 0.02

    # 1) Small feature map (hw=64 < 128): one lane-dense masked partial block per image.
    out = jax.block_until_ready(attention_layer(x, w1, b1, w2, b2))
    ref = _reference(x, w1, b1, w2, b2)
    assert out.shape == x.shape
    assert jnp.allclose(out, ref, atol=1e-3, rtol=1e-3), "mismatch (small map)"

    # 2) Ragged multi-block path (hw=225 -> 128-wide blocks, trailing partial block).
    H2, W2 = 15, 15
    x2 = jax.random.normal(kx, (N, C, H2, W2), dtype=jnp.float32)
    out2 = jax.block_until_ready(attention_layer(x2, w1, b1, w2, b2, max_block_hw=128))
    ref2 = _reference(x2, w1, b1, w2, b2)
    assert out2.shape == x2.shape
    assert jnp.allclose(out2, ref2, atol=1e-3, rtol=1e-3), "mismatch (ragged tiled)"

    # 3) Single image: block split so the grid has >= 2 steps (v7x megacore path).
    x3 = jax.random.normal(kx, (1, C, 16, 16), dtype=jnp.float32)
    out3 = jax.block_until_ready(attention_layer(x3, w1, b1, w2, b2))
    ref3 = _reference(x3, w1, b1, w2, b2)
    assert jnp.allclose(out3, ref3, atol=1e-3, rtol=1e-3), "mismatch (megacore split)"

    # 4) bf16 activations with f32 accumulation inside the kernel.
    xb = x.astype(jnp.bfloat16)
    outb = jax.block_until_ready(attention_layer(xb, w1, b1, w2, b2))
    refb = _reference(xb, w1, b1, w2, b2)
    assert outb.dtype == jnp.bfloat16
    assert jnp.allclose(outb.astype(jnp.float32), refb, atol=2e-2, rtol=2e-2), "mismatch (bf16)"

    print("KERNEL_OK")
</pallas_src>

<mosaic_0001>
module attributes {stable_mosaic.version = 11 : i64} {
  func.func @_attn_gate_kernel(%arg0: i32, %arg1: i32, %arg2: memref<1x256x128xf32, #tpu.memory_space<vmem>>, %arg3: memref<256x1xf32, #tpu.memory_space<vmem>>, %arg4: memref<1xf32, #tpu.memory_space<smem>>, %arg5: memref<1x256x128xf32, #tpu.memory_space<vmem>>) attributes {dimension_semantics = [#tpu.dimension_semantics<parallel>, #tpu.dimension_semantics<parallel>], iteration_bounds = array<i64: 2, 1>, scalar_prefetch = 0 : i64, scratch_operands = 0 : i64, tpu.core_type = #tpu.core_type<tc>, window_params = [{transform_indices = @transform_0, window_bounds = array<i64: 1, 256, 128>}, {pipeline_mode = #tpu.pipeline_mode<synchronous>, transform_indices = @transform_1, window_bounds = array<i64: 256, 1>}, {transform_indices = @transform_2, window_bounds = array<i64: 1>}, {transform_indices = @transform_3, window_bounds = array<i64: 1, 256, 128>}]} {
    %c0 = arith.constant 0 : index
    %c0_0 = arith.constant 0 : index
    %c0_1 = arith.constant 0 : index
    %0 = vector.load %arg2[%c0, %c0_0, %c0_1] : memref<1x256x128xf32, #tpu.memory_space<vmem>>, vector<1x256x128xf32>
    %1 = vector.shape_cast %0 : vector<1x256x128xf32> to vector<256x128xf32>
    %c0_2 = arith.constant 0 : index
    %c0_3 = arith.constant 0 : index
    %2 = vector.load %arg3[%c0_2, %c0_3] : memref<256x1xf32, #tpu.memory_space<vmem>>, vector<256x1xf32>
    %3 = vector.broadcast %2 : vector<256x1xf32> to vector<256x128xf32>
    %4 = arith.mulf %1, %3 : vector<256x128xf32>
    %cst = arith.constant dense<0.000000e+00> : vector<128xf32>
    %5 = vector.multi_reduction <add>, %4, %cst [0] : vector<256x128xf32> to vector<128xf32>
    %6 = vector.shape_cast %5 : vector<128xf32> to vector<1x128xf32>
    %c0_4 = arith.constant 0 : index
    %7 = memref.load %arg4[%c0_4] : memref<1xf32, #tpu.memory_space<smem>>
    %8 = vector.broadcast %7 : f32 to vector<1x128xf32>
    %9 = arith.addf %6, %8 : vector<1x128xf32>
    %cst_5 = arith.constant 1.000000e+00 : f32
    %10 = vector.broadcast %cst_5 : f32 to vector<1x128xf32>
    %11 = arith.addf %10, %9 : vector<1x128xf32>
    %12 = vector.broadcast %11 : vector<1x128xf32> to vector<256x128xf32>
    %13 = arith.mulf %1, %12 : vector<256x128xf32>
    %c0_6 = arith.constant 0 : index
    %c0_7 = arith.constant 0 : index
    %c0_8 = arith.constant 0 : index
    %14 = vector.load %arg5[%c0_6, %c0_7, %c0_8] : memref<1x256x128xf32, #tpu.memory_space<vmem>>, vector<1x256x128xf32>
    %15 = vector.shape_cast %14 : vector<1x256x128xf32> to vector<256x128xf32>
    %16 = vector.shape_cast %13 : vector<256x128xf32> to vector<1x256x128xf32>
    tpu.vector_store %arg5[%c0_6, %c0_7, %c0_8], %16 {strides = array<i32>} : memref<1x256x128xf32, #tpu.memory_space<vmem>>, vector<1x256x128xf32>,
    return
  }
  func.func @transform_0(%arg0: i32, %arg1: i32) -> (i32, i32, i32) {
    %c0_i32 = arith.constant 0 : i32
    %c0_i32_0 = arith.constant 0 : i32
    return %arg0, %c0_i32, %arg1 : i32, i32, i32
  }
  func.func @transform_1(%arg0: i32, %arg1: i32) -> (i32, i32) {
    %c0_i32 = arith.constant 0 : i32
    %c0_i32_0 = arith.constant 0 : i32
    %c0_i32_1 = arith.constant 0 : i32
    return %c0_i32, %c0_i32_0 : i32, i32
  }
  func.func @transform_2(%arg0: i32, %arg1: i32) -> i32 {
    %c0_i32 = arith.constant 0 : i32
    %c0_i32_0 = arith.constant 0 : i32
    return %c0_i32 : i32
  }
  func.func @transform_3(%arg0: i32, %arg1: i32) -> (i32, i32, i32) {
    %c0_i32 = arith.constant 0 : i32
    %c0_i32_0 = arith.constant 0 : i32
    return %arg0, %c0_i32, %arg1 : i32, i32, i32
  }
}

</mosaic_0001>

<bundles_post_ra>
// kernel: tpu_custom_call.1
= control target key start
LH: loop header
LB: loop body
LE: loop exit
PB: predicated region body
PF: predicated region fallthrough
CT: control target
= control target key end

     0   :  { %s735_s14 = smov 0   ;;  %s737_s15 = smov 0   ;;  %s1071_s0 = inlined_call_operand.vmem [shape: f32[2,256,64], index: 0, kind: input, shape index: {}]   ;;  %s1072_s1 = inlined_call_operand.vmem [shape: f32[256,1], index: 1, kind: input, shape index: {}]   ;;  %s1073_s2 = inlined_call_operand.<no memory space> [shape: f32[1], index: 2, kind: input, shape index: {}]   ;;  %s1074_s3 = inlined_call_operand.vmem [shape: f32[2,256,64], index: 3, kind: output, shape index: {}]  }
   0x1   :  { %8 = sst [smem:[#allocation2]] %s1073_s2  ;;  %s739_s16 = smov 0  }
   0x2 LB: > { %s26_s2 = sadd.s32 1, %s705_s15  ;;  %p651_p0 = scmp.ge.s32.totalorder %s709_s16, 1  ;;  %s709_s16 = sphi %s739_s16, %s14_s16   ;;  %s705_s15 = sphi %s737_s15, %s1076_s15   ;;  %s701_s14 = sphi %s735_s14, %s1075_s14  }
   0x3   : > { %p28_p1 = scmp.ge.s32.totalorder %s26_s2, 2  ;;  %p157_p2 = scmp.lt.s32.totalorder %s709_s16, 3 }
   0x5   : > { %s1078_s2 = smov (%p28_p1, %s26_s2), 0  ;;  %p158_p3 = pnand %p651_p0, %p157_p2 }
   0x6   : > { %p187_p4 = scmp.lt.s32.totalorder (!%p158_p3), %s701_s14, 1  ;;  %s496_s10 = sld [smem:[#allocation2]] (!%p158_p3) }
   0x7   : > { %161 = sbr.rel (%p158_p3) target bundleno = 241 (0xf1), region = 32 }
   0xc   : > { %v237_v0 = vld [vmem:[%s1072_s1 + $0x10] sm:$0xff]  ;;  %v235_v1 = vld [vmem:[%s1072_s1] sm:$0xff]  ;;  %v711_v2 = vmov 0   ;;  %v238_v3 = vld [vmem:[%s1072_s1 + $0x18] sm:$0xff]  ;;  %s1080_s14 = smov (!%p187_p4, %s701_s14), 1 }
   0xd   : > { %686 = vset.pattern.permute.xlu1 %v711_v2  ;;  %685 = vset.pattern.permute.xlu0 %v711_v2  ;;  %v236_v4 = vld [vmem:[%s1072_s1 + $0x8] sm:$0xff]  ;;  %v239_v6 = vld [vmem:[%s1072_s1 + $0x20] sm:$0xff]  ;;  %v242_v7 = vld [vmem:[%s1072_s1 + $0x38] sm:$0xff]  ;;  %s658_s6 = sshll.u32 %s1080_s14, 8 }
   0xe   : > { %279 = vperm.xlu1 %686, %v237_v0   ;;  %269 = vperm.xlu0 %685, %v235_v1   ;;  %v240_v5 = vld [vmem:[%s1072_s1 + $0x28] sm:$0xff]  ;;  %v241_v8 = vld [vmem:[%s1072_s1 + $0x30] sm:$0xff]  ;;  %v243_v10 = vld [vmem:[%s1072_s1 + $0x40] sm:$0xff]  ;;  %s861_s9 = scalar_lea.vmem %s1071_s0, %s658_s6  ;;  %s996_s13 = scalar_lea.vmem %s1074_s3, %s658_s6 }
   0xf   : > { %v244_v9 = vld [vmem:[%s1072_s1 + $0x48] sm:$0xff]  ;;  %v246_v11 = vld [vmem:[%s1072_s1 + $0x58] sm:$0xff]  ;;  %v245_v12 = vld [vmem:[%s1072_s1 + $0x50] sm:$0xff] }
  0x10   : > { %v248_v13 = vld [vmem:[%s1072_s1 + $0x68] sm:$0xff]  ;;  %v247_v14 = vld [vmem:[%s1072_s1 + $0x60] sm:$0xff]  ;;  %v250_v15 = vld [vmem:[%s1072_s1 + $0x78] sm:$0xff] }
  0x11   : > { %v249_v16 = vld [vmem:[%s1072_s1 + $0x70] sm:$0xff]  ;;  %v252_v17 = vld [vmem:[%s1072_s1 + $0x88] sm:$0xff]  ;;  %v251_v18 = vld [vmem:[%s1072_s1 + $0x80] sm:$0xff] }
  0x12   : > { %284 = vperm.xlu1 %686, %v238_v3   ;;  %274 = vperm.xlu0 %685, %v236_v4   ;;  %v254_v19 = vld [vmem:[%s1072_s1 + $0x98] sm:$0xff]  ;;  %v253_v20 = vld [vmem:[%s1072_s1 + $0x90] sm:$0xff]  ;;  %v256_v21 = vld [vmem:[%s1072_s1 + $0xa8] sm:$0xff] }
  0x13   : > { %v255_v22 = vld [vmem:[%s1072_s1 + $0xa0] sm:$0xff]  ;;  %v258_v23 = vld [vmem:[%s1072_s1 + $0xb8] sm:$0xff]  ;;  %v257_v24 = vld [vmem:[%s1072_s1 + $0xb0] sm:$0xff] }
  0x14   : > { %v260_v25 = vld [vmem:[%s1072_s1 + $0xc8] sm:$0xff]  ;;  %v259_v26 = vld [vmem:[%s1072_s1 + $0xc0] sm:$0xff]  ;;  %v262_v27 = vld [vmem:[%s1072_s1 + $0xd8] sm:$0xff] }
  0x15   : > { %v261_v28 = vld [vmem:[%s1072_s1 + $0xd0] sm:$0xff]  ;;  %v264_v29 = vld [vmem:[%s1072_s1 + $0xe8] sm:$0xff]  ;;  %v263_v30 = vld [vmem:[%s1072_s1 + $0xe0] sm:$0xff] }
  0x16   : > { %294 = vperm.xlu1 %686, %v240_v5   ;;  %289 = vperm.xlu0 %685, %v239_v6   ;;  %v266_v31 = vld [vmem:[%s1072_s1 + $0xf8] sm:$0xff]  ;;  %v265_v32 = vld [vmem:[%s1072_s1 + $0xf0] sm:$0xff]  ;;  %v864_v35 = vld [vmem:[%s861_s9] sm:$0xff] }
  0x17   : > { %v867_v36 = vld [vmem:[%s861_s9 + $0x8] sm:$0xff]  ;;  %v870_v37 = vld [vmem:[%s861_s9 + $0x10] sm:$0xff]  ;;  %v875_v42 = vld [vmem:[%s861_s9 + $0x18] sm:$0xff] }
  0x18   : > { %v879_v47 = vld [vmem:[%s861_s9 + $0x20] sm:$0xff]  ;;  %v883_v50 = vld [vmem:[%s861_s9 + $0x28] sm:$0xff]  ;;  %v887_v55 = vld [vmem:[%s861_s9 + $0x30] sm:$0xff] }
  0x19   : > { %v891_v58 = vld [vmem:[%s861_s9 + $0x38] sm:$0xff]  ;;  %v895_v63 = vld [vmem:[%s861_s9 + $0x40] sm:$0xff]  ;;  %v899_v2 = vld [vmem:[%s861_s9 + $0x48] sm:$0xff] }
  0x1a   : > { %304 = vperm.xlu1 %686, %v242_v7   ;;  %299 = vperm.xlu0 %685, %v241_v8   ;;  %v903_v7 = vld [vmem:[%s861_s9 + $0x50] sm:$0xff] }
  0x1e   : > { %314 = vperm.xlu1 %686, %v244_v9   ;;  %309 = vperm.xlu0 %685, %v243_v10   ;;  %v907_v10 = vld [vmem:[%s861_s9 + $0x58] sm:$0xff] }
  0x22   : > { %324 = vperm.xlu1 %686, %v246_v11   ;;  %319 = vperm.xlu0 %685, %v245_v12  }
  0x26   : > { %334 = vperm.xlu1 %686, %v248_v13   ;;  %329 = vperm.xlu0 %685, %v247_v14  }
  0x2a   : > { %344 = vperm.xlu1 %686, %v250_v15   ;;  %339 = vperm.xlu0 %685, %v249_v16   ;;  %v911_v15 = vld [vmem:[%s861_s9 + $0x60] sm:$0xff] }
  0x2e   : > { %354 = vperm.xlu1 %686, %v252_v17   ;;  %349 = vperm.xlu0 %685, %v251_v18   ;;  %v915_v18 = vld [vmem:[%s861_s9 + $0x68] sm:$0xff] }
  0x32   : > { %364 = vperm.xlu1 %686, %v254_v19   ;;  %359 = vperm.xlu0 %685, %v253_v20  }
  0x36   : > { %374 = vperm.xlu1 %686, %v256_v21   ;;  %369 = vperm.xlu0 %685, %v255_v22  }
  0x3a   : > { %384 = vperm.xlu1 %686, %v258_v23   ;;  %379 = vperm.xlu0 %685, %v257_v24   ;;  %v919_v23 = vld [vmem:[%s861_s9 + $0x70] sm:$0xff] }
  0x3e   : > { %394 = vperm.xlu1 %686, %v260_v25   ;;  %389 = vperm.xlu0 %685, %v259_v26   ;;  %v923_v26 = vld [vmem:[%s861_s9 + $0x78] sm:$0xff] }
  0x42   : > { %404 = vperm.xlu1 %686, %v262_v27   ;;  %399 = vperm.xlu0 %685, %v261_v28  }
  0x46   : > { %414 = vperm.xlu1 %686, %v264_v29   ;;  %409 = vperm.xlu0 %685, %v263_v30  }
  0x4a   : > { %424 = vperm.xlu1 %686, %v266_v31   ;;  %419 = vperm.xlu0 %685, %v265_v32   ;;  %v927_v31 = vld [vmem:[%s861_s9 + $0x80] sm:$0xff] }
  0x89   : > { %v280_v33 = vpop.permute.xlu1 %279  ;;  %v270_v34 = vpop.permute.xlu0 %269 }
  0x8a   : > { %v427_v40 = vmul.f32 %v270_v34, %v864_v35  ;;  %v429_v43 = vmul.f32 %v280_v33, %v870_v37  ;;  %v931_v34 = vld [vmem:[%s861_s9 + $0x88] sm:$0xff] }
  0x8d   : > { %v285_v38 = vpop.permute.xlu1 %284  ;;  %v275_v39 = vpop.permute.xlu0 %274 }
  0x8e   : > { %v428_v41 = vmul.f32 %v275_v39, %v867_v36  ;;  %v430_v48 = vmul.f32 %v285_v38, %v875_v42 }
  0x90   : > { %v459_v44 = vadd.f32 %v428_v41, %v427_v40 }
  0x91   : > { %v295_v45 = vpop.permute.xlu1 %294  ;;  %v290_v46 = vpop.permute.xlu0 %289 }
  0x92   : > { %v460_v49 = vadd.f32 %v459_v44, %v429_v43  ;;  %v431_v51 = vmul.f32 %v290_v46, %v879_v47  ;;  %v432_v56 = vmul.f32 %v295_v45, %v883_v50  ;;  %v935_v43 = vld [vmem:[%s861_s9 + $0x90] sm:$0xff]  ;;  %v939_v46 = vld [vmem:[%s861_s9 + $0x98] sm:$0xff] }
  0x94   : > { %v461_v52 = vadd.f32 %v460_v49, %v430_v48 }
  0x95   : > { %v305_v53 = vpop.permute.xlu1 %304  ;;  %v300_v54 = vpop.permute.xlu0 %299 }
  0x96   : > { %v462_v57 = vadd.f32 %v461_v52, %v431_v51  ;;  %v433_v59 = vmul.f32 %v300_v54, %v887_v55  ;;  %v434_v0 = vmul.f32 %v305_v53, %v891_v58  ;;  %v943_v53 = vld [vmem:[%s861_s9 + $0xa0] sm:$0xff] }
  0x98   : > { %v463_v60 = vadd.f32 %v462_v57, %v432_v56  ;;  %v947_v57 = vld [vmem:[%s861_s9 + $0xa8] sm:$0xff] }
  0x99   : > { %v315_v61 = vpop.permute.xlu1 %314  ;;  %v310_v62 = vpop.permute.xlu0 %309 }
  0x9a   : > { %v464_v1 = vadd.f32 %v463_v60, %v433_v59  ;;  %v435_v3 = vmul.f32 %v310_v62, %v895_v63  ;;  %v436_v8 = vmul.f32 %v315_v61, %v899_v2 }
  0x9c   : > { %v465_v4 = vadd.f32 %v464_v1, %v434_v0  ;;  %v951_v0 = vld [vmem:[%s861_s9 + $0xb0] sm:$0xff] }
  0x9d   : > { %v325_v5 = vpop.permute.xlu1 %324  ;;  %v320_v6 = vpop.permute.xlu0 %319 }
  0x9e   : > { %v466_v9 = vadd.f32 %v465_v4, %v435_v3  ;;  %v437_v11 = vmul.f32 %v320_v6, %v903_v7  ;;  %v438_v16 = vmul.f32 %v325_v5, %v907_v10  ;;  %v955_v4 = vld [vmem:[%s861_s9 + $0xb8] sm:$0xff] }
  0xa0   : > { %v467_v12 = vadd.f32 %v466_v9, %v436_v8 }
  0xa1   : > { %v335_v13 = vpop.permute.xlu1 %334  ;;  %v330_v14 = vpop.permute.xlu0 %329 }
  0xa2   : > { %v468_v17 = vadd.f32 %v467_v12, %v437_v11  ;;  %v439_v19 = vmul.f32 %v330_v14, %v911_v15  ;;  %v440_v24 = vmul.f32 %v335_v13, %v915_v18  ;;  %v959_v11 = vld [vmem:[%s861_s9 + $0xc0] sm:$0xff]  ;;  %v963_v14 = vld [vmem:[%s861_s9 + $0xc8] sm:$0xff] }
  0xa4   : > { %v469_v20 = vadd.f32 %v468_v17, %v438_v16 }
  0xa5   : > { %v345_v21 = vpop.permute.xlu1 %344  ;;  %v340_v22 = vpop.permute.xlu0 %339 }
  0xa6   : > { %v470_v25 = vadd.f32 %v469_v20, %v439_v19  ;;  %v441_v27 = vmul.f32 %v340_v22, %v919_v23  ;;  %v442_v32 = vmul.f32 %v345_v21, %v923_v26  ;;  %v967_v21 = vld [vmem:[%s861_s9 + $0xd0] sm:$0xff] }
  0xa8   : > { %v471_v28 = vadd.f32 %v470_v25, %v440_v24  ;;  %v971_v25 = vld [vmem:[%s861_s9 + $0xd8] sm:$0xff] }
  0xa9   : > { %v355_v29 = vpop.permute.xlu1 %354  ;;  %v350_v30 = vpop.permute.xlu0 %349 }
  0xaa   : > { %v472_v33 = vadd.f32 %v471_v28, %v441_v27  ;;  %v443_v38 = vmul.f32 %v350_v30, %v927_v31  ;;  %v444_v44 = vmul.f32 %v355_v29, %v931_v34 }
  0xac   : > { %v473_v39 = vadd.f32 %v472_v33, %v442_v32  ;;  %v975_v32 = vld [vmem:[%s861_s9 + $0xe0] sm:$0xff] }
  0xad   : > { %v365_v40 = vpop.permute.xlu1 %364  ;;  %v360_v41 = vpop.permute.xlu0 %359 }
  0xae   : > { %v474_v45 = vadd.f32 %v473_v39, %v443_v38  ;;  %v445_v48 = vmul.f32 %v360_v41, %v935_v43  ;;  %v446_v54 = vmul.f32 %v365_v40, %v939_v46  ;;  %v979_v39 = vld [vmem:[%s861_s9 + $0xe8] sm:$0xff] }
  0xb0   : > { %v475_v49 = vadd.f32 %v474_v45, %v444_v44  ;;  %v983_v45 = vld [vmem:[%s861_s9 + $0xf0] sm:$0xff] }
  0xb1   : > { %v375_v51 = vpop.permute.xlu1 %374  ;;  %v370_v52 = vpop.permute.xlu0 %369 }
  0xb2   : > { %v476_v56 = vadd.f32 %v475_v49, %v445_v48  ;;  %v447_v59 = vmul.f32 %v370_v52, %v943_v53  ;;  %v448_v1 = vmul.f32 %v375_v51, %v947_v57  ;;  %v987_v52 = vld [vmem:[%s861_s9 + $0xf8] sm:$0xff] }
  0xb4   : > { %v477_v60 = vadd.f32 %v476_v56, %v446_v54 }
  0xb5   : > { %v385_v61 = vpop.permute.xlu1 %384  ;;  %v380_v62 = vpop.permute.xlu0 %379 }
  0xb6   : > { %v478_v3 = vadd.f32 %v477_v60, %v447_v59  ;;  %v449_v5 = vmul.f32 %v380_v62, %v951_v0  ;;  %v450_v12 = vmul.f32 %v385_v61, %v955_v4 }
  0xb8   : > { %v479_v6 = vadd.f32 %v478_v3, %v448_v1 }
  0xb9   : > { %v395_v8 = vpop.permute.xlu1 %394  ;;  %v390_v9 = vpop.permute.xlu0 %389 }
  0xba   : > { %v480_v13 = vadd.f32 %v479_v6, %v449_v5  ;;  %v451_v16 = vmul.f32 %v390_v9, %v959_v11  ;;  %v452_v22 = vmul.f32 %v395_v8, %v963_v14  ;;  %v497_v8 = vstv %s496_s10 }
  0xbc   : > { %v481_v17 = vadd.f32 %v480_v13, %v450_v12 }
  0xbd   : > { %v405_v19 = vpop.permute.xlu1 %404  ;;  %v400_v20 = vpop.permute.xlu0 %399 }
  0xbe   : > { %v482_v24 = vadd.f32 %v481_v17, %v451_v16  ;;  %v453_v27 = vmul.f32 %v400_v20, %v967_v21  ;;  %v454_v33 = vmul.f32 %v405_v19, %v971_v25 }
  0xc0   : > { %v483_v28 = vadd.f32 %v482_v24, %v452_v22 }
  0xc1   : > { %v415_v29 = vpop.permute.xlu1 %414  ;;  %v410_v30 = vpop.permute.xlu0 %409 }
  0xc2   : > { %v484_v38 = vadd.f32 %v483_v28, %v453_v27  ;;  %v455_v40 = vmul.f32 %v410_v30, %v975_v32  ;;  %v456_v48 = vmul.f32 %v415_v29, %v979_v39 }
  0xc4   : > { %v485_v41 = vadd.f32 %v484_v38, %v454_v33 }
  0xc5   : > { %v420_v44 = vpop.permute.xlu0 %419  ;;  %v425_v51 = vpop.permute.xlu1 %424 }
  0xc6   : > { %v486_v49 = vadd.f32 %v485_v41, %v455_v40  ;;  %v457_v54 = vmul.f32 %v420_v44, %v983_v45  ;;  %v458_v59 = vmul.f32 %v425_v51, %v987_v52 }
  0xc8   : > { %v487_v56 = vadd.f32 %v486_v49, %v456_v48 }
  0xca   : > { %v488_v60 = vadd.f32 %v487_v56, %v457_v54 }
  0xcc   : > { %v489_v61 = vadd.f32 %v488_v60, %v458_v59 }
  0xce   : > { %v490_v62 = vrot.slane %v489_v61, 4 }
  0xd0   : > { %v491_v1 = vadd.f32 %v490_v62, %v489_v61 }
  0xd2   : > { %v492_v3 = vrot.slane %v491_v1, 2 }
  0xd4   : > { %v493_v5 = vadd.f32 %v492_v3, %v491_v1 }
  0xd6   : > { %v494_v6 = vrot.slane %v493_v5, 1 }
  0xd8   : > { %v495_v9 = vadd.f32 %v494_v6, %v493_v5 }
  0xda   : > { %v498_v12 = vadd.f32 %v497_v8, %v495_v9 }
  0xdc   : > { %v499_v13 = vadd.f32 1.0, %v498_v12 }
  0xde   : > { %v500_v16 = vmul.f32 %v499_v13, %v864_v35  ;;  %v501_v17 = vmul.f32 %v499_v13, %v867_v36  ;;  %v502_v19 = vmul.f32 %v499_v13, %v870_v37  ;;  %v503_v20 = vmul.f32 %v499_v13, %v875_v42 }
  0xdf   : > { %v504_v22 = vmul.f32 %v499_v13, %v879_v47  ;;  %v505_v24 = vmul.f32 %v499_v13, %v883_v50  ;;  %v506_v27 = vmul.f32 %v499_v13, %v887_v55  ;;  %v507_v28 = vmul.f32 %v499_v13, %v891_v58 }
  0xe0   : > { %v508_v35 = vmul.f32 %v499_v13, %v895_v63  ;;  %v509_v36 = vmul.f32 %v499_v13, %v899_v2  ;;  %v510_v37 = vmul.f32 %v499_v13, %v903_v7  ;;  %v511_v42 = vmul.f32 %v499_v13, %v907_v10  ;;  %532 = vst [vmem:[%s996_s13] sm:$0xff] %v500_v16 }
  0xe1   : > { %533 = vst [vmem:[%s996_s13 + $0x8] sm:$0xff] %v501_v17  ;;  %534 = vst [vmem:[%s996_s13 + $0x10] sm:$0xff] %v502_v19  ;;  %v512_v47 = vmul.f32 %v499_v13, %v911_v15  ;;  %v513_v50 = vmul.f32 %v499_v13, %v915_v18  ;;  %v514_v55 = vmul.f32 %v499_v13, %v919_v23 }
  0xe2   : > { %535 = vst [vmem:[%s996_s13 + $0x18] sm:$0xff] %v503_v20  ;;  %v515_v58 = vmul.f32 %v499_v13, %v923_v26  ;;  %536 = vst [vmem:[%s996_s13 + $0x20] sm:$0xff] %v504_v22  ;;  %v516_v63 = vmul.f32 %v499_v13, %v927_v31  ;;  %v517_v2 = vmul.f32 %v499_v13, %v931_v34 }
  0xe3   : > { %537 = vst [vmem:[%s996_s13 + $0x28] sm:$0xff] %v505_v24  ;;  %538 = vst [vmem:[%s996_s13 + $0x30] sm:$0xff] %v506_v27  ;;  %v518_v7 = vmul.f32 %v499_v13, %v935_v43  ;;  %v519_v10 = vmul.f32 %v499_v13, %v939_v46  ;;  %v520_v15 = vmul.f32 %v499_v13, %v943_v53 }
  0xe4   : > { %539 = vst [vmem:[%s996_s13 + $0x38] sm:$0xff] %v507_v28  ;;  %540 = vst [vmem:[%s996_s13 + $0x40] sm:$0xff] %v508_v35  ;;  %v521_v18 = vmul.f32 %v499_v13, %v947_v57  ;;  %v522_v23 = vmul.f32 %v499_v13, %v951_v0  ;;  %v523_v26 = vmul.f32 %v499_v13, %v955_v4 }
  0xe5   : > { %541 = vst [vmem:[%s996_s13 + $0x48] sm:$0xff] %v509_v36  ;;  %542 = vst [vmem:[%s996_s13 + $0x50] sm:$0xff] %v510_v37  ;;  %v524_v31 = vmul.f32 %v499_v13, %v959_v11  ;;  %v525_v34 = vmul.f32 %v499_v13, %v963_v14  ;;  %v526_v43 = vmul.f32 %v499_v13, %v967_v21 }
  0xe6   : > { %543 = vst [vmem:[%s996_s13 + $0x58] sm:$0xff] %v511_v42  ;;  %544 = vst [vmem:[%s996_s13 + $0x60] sm:$0xff] %v512_v47  ;;  %v527_v46 = vmul.f32 %v499_v13, %v971_v25  ;;  %v528_v53 = vmul.f32 %v499_v13, %v975_v32  ;;  %v529_v57 = vmul.f32 %v499_v13, %v979_v39 }
  0xe7   : > { %545 = vst [vmem:[%s996_s13 + $0x68] sm:$0xff] %v513_v50  ;;  %546 = vst [vmem:[%s996_s13 + $0x70] sm:$0xff] %v514_v55  ;;  %v530_v0 = vmul.f32 %v499_v13, %v983_v45  ;;  %v531_v4 = vmul.f32 %v499_v13, %v987_v52 }
  0xe8   : > { %547 = vst [vmem:[%s996_s13 + $0x78] sm:$0xff] %v515_v58  ;;  %548 = vst [vmem:[%s996_s13 + $0x80] sm:$0xff] %v516_v63 }
  0xe9   : > { %549 = vst [vmem:[%s996_s13 + $0x88] sm:$0xff] %v517_v2  ;;  %550 = vst [vmem:[%s996_s13 + $0x90] sm:$0xff] %v518_v7 }
  0xea   : > { %551 = vst [vmem:[%s996_s13 + $0x98] sm:$0xff] %v519_v10  ;;  %552 = vst [vmem:[%s996_s13 + $0xa0] sm:$0xff] %v520_v15 }
  0xeb   : > { %553 = vst [vmem:[%s996_s13 + $0xa8] sm:$0xff] %v521_v18  ;;  %554 = vst [vmem:[%s996_s13 + $0xb0] sm:$0xff] %v522_v23 }
  0xec   : > { %555 = vst [vmem:[%s996_s13 + $0xb8] sm:$0xff] %v523_v26  ;;  %556 = vst [vmem:[%s996_s13 + $0xc0] sm:$0xff] %v524_v31 }
  0xed   : > { %557 = vst [vmem:[%s996_s13 + $0xc8] sm:$0xff] %v525_v34  ;;  %558 = vst [vmem:[%s996_s13 + $0xd0] sm:$0xff] %v526_v43 }
  0xee   : > { %559 = vst [vmem:[%s996_s13 + $0xd8] sm:$0xff] %v527_v46  ;;  %560 = vst [vmem:[%s996_s13 + $0xe0] sm:$0xff] %v528_v53 }
  0xef   : > { %561 = vst [vmem:[%s996_s13 + $0xe8] sm:$0xff] %v529_v57  ;;  %562 = vst [vmem:[%s996_s13 + $0xf0] sm:$0xff] %v530_v0 }
  0xf0   : > { %563 = vst [vmem:[%s996_s13 + $0xf8] sm:$0xff] %v531_v4 }
  0xf1 PF: > { %s14_s16 = sadd.s32 1, %s709_s16   ;;  %s1075_s14 = smov %s705_s15 }
  0xf2   : > { %p11_p5 = scmp.ge.s32.totalorder %s14_s16, 4   ;;  %s1076_s15 = smov %s1078_s2 }
  0xf4   :  { %13 = sbr.rel (!%p11_p5) target bundleno = 2 (0x2), region = 62 }

</bundles_post_ra>
